<compile_context>
chip_gen: v7x
topology: tpu7x:2x2x1
jax: 0.10.0
libtpu: 0.0.40
codegen_flags: <defaults>
</compile_context>

<pallas_src>
import jax
import jax.numpy as jnp
from jax.experimental import pallas as pl
from jax.experimental.pallas import tpu as pltpu

MASK_TOKEN_ID = 3


def _round_up(x, m):
    return ((x + m - 1) // m) * m


def _make_kernel(mask_token_id, vocab, tile_rows, inner, n_rows):
    def kernel(logits_ref, targets_ref, corr_ref, tot_ref):
        c = pl.program_id(0)   # outer "parallel" partition axis
        i = pl.program_id(1)   # inner "arbitrary" row-tile axis

        @pl.when(i == 0)
        def _():
            corr_ref[...] = jnp.zeros_like(corr_ref)
            tot_ref[...] = jnp.zeros_like(tot_ref)

        logits = logits_ref[...]      # (TR, V) in native dtype (f32 or bf16)
        targets = targets_ref[...]    # (TR, 1) int32

        # argmax over vocab with first-maximal-index tie-break (torch.argmax).
        row_max = jnp.max(logits, axis=-1, keepdims=True)
        col_idx = jax.lax.broadcasted_iota(jnp.int32, (1, vocab), 1)
        cand = jnp.where(logits == row_max, col_idx, jnp.int32(vocab))
        predicted = jnp.min(cand, axis=-1, keepdims=True)   # (TR, 1) int32

        # Row-validity mask: the grid may over-cover the row range (partial
        # boundary tile and/or clamped duplicate tiles at the tail); invalid
        # rows contribute nothing.  Uses the UNclamped step index so that
        # duplicate (clamped) tiles are fully masked out.
        step = c * inner + i
        row_ids = step * tile_rows + jax.lax.broadcasted_iota(
            jnp.int32, (tile_rows, 1), 0)
        valid = row_ids < n_rows

        is_mask = jnp.logical_and(valid, targets == mask_token_id)
        correct = jnp.logical_and(is_mask, predicted == targets)

        # Vector-resident per-row accumulation: the output block is revisited
        # across the inner grid axis, so it acts as the accumulator.
        corr_ref[...] += correct.astype(jnp.float32)
        tot_ref[...] += is_mask.astype(jnp.float32)

    return kernel


def masked_lm_accuracy(logits, targets, *, mask_token_id=MASK_TOKEN_ID,
                       num_partitions=2, target_tile_bytes=8 * 1024 * 1024):
    """logits: [B, S, V] float (any dtype); targets: [B, S] int. Scalar f32."""
    B, S, V = logits.shape
    N = B * S

    logits2d = logits.reshape(N, V)                       # view, no HBM copy
    targets2d = targets.reshape(N, 1).astype(jnp.int32)   # tiny

    # --- pick the largest row tile that keeps ~target_tile_bytes of logits
    #     per grid step (2 pipeline buffers of this stay well under the
    #     scoped-VMEM limit on every generation, incl. v7x's 64 MiB VMEM).
    itemsize = jnp.dtype(logits2d.dtype).itemsize
    sublane_mult = 8 * max(1, 4 // itemsize)       # 8 for f32, 16 for bf16
    row_bytes = max(1, V * itemsize)
    cap = (target_tile_bytes // row_bytes) // sublane_mult * sublane_mult
    per_part = _round_up(pl.cdiv(N, num_partitions), sublane_mult)
    tile_rows = int(max(sublane_mult, min(1024, max(sublane_mult, cap), per_part)))

    total_blocks = int(pl.cdiv(N, tile_rows))
    inner = int(pl.cdiv(total_blocks, num_partitions))
    max_block = total_blocks - 1

    kernel = _make_kernel(mask_token_id, V, tile_rows, inner, N)

    # Clamp the row-block index: grid steps beyond the last real block re-read
    # the last block (their contribution is masked out in-kernel), so no row
    # padding / HBM copy of the logits is ever needed.
    def in_row_map(c, i):
        return (jnp.minimum(c * inner + i, max_block), 0)

    corr, tot = pl.pallas_call(
        kernel,
        out_shape=(
            jax.ShapeDtypeStruct((num_partitions * tile_rows, 1), jnp.float32),
            jax.ShapeDtypeStruct((num_partitions * tile_rows, 1), jnp.float32),
        ),
        grid_spec=pltpu.PrefetchScalarGridSpec(
            num_scalar_prefetch=0,
            grid=(num_partitions, inner),
            in_specs=[
                pl.BlockSpec((tile_rows, V), in_row_map),
                pl.BlockSpec((tile_rows, 1), in_row_map),
            ],
            out_specs=[
                pl.BlockSpec((tile_rows, 1), lambda c, i: (c, 0)),
                pl.BlockSpec((tile_rows, 1), lambda c, i: (c, 0)),
            ],
        ),
        compiler_params=pltpu.CompilerParams(
            dimension_semantics=("parallel", "arbitrary"),
            vmem_limit_bytes=32 * 1024 * 1024,
        ),
    )(logits2d, targets2d)

    # Tiny final reduction + divide in plain JAX (matches torch, incl. NaN
    # when there are no masked positions).
    return jnp.sum(corr) / jnp.sum(tot)


if __name__ == "__main__":
    key = jax.random.PRNGKey(0)
    B, S, V = 2, 8, 32

    k_logits, k_targets = jax.random.split(key)
    logits = jax.random.normal(k_logits, (B, S, V), dtype=jnp.float32)
    targets = jax.random.randint(k_targets, (B, S), 0, V, dtype=jnp.int32)
    # Deterministically ensure some positions are masked (mask_token_id = 3).
    targets = targets.at[:, ::3].set(MASK_TOKEN_ID)

    def ref_accuracy(lg, tg):
        pred = jnp.argmax(lg, axis=-1)
        is_mask = tg == MASK_TOKEN_ID
        c = jnp.sum(((pred == tg) & is_mask).astype(jnp.float32))
        return c / jnp.sum(is_mask.astype(jnp.float32))

    # float32 path
    acc = jax.block_until_ready(masked_lm_accuracy(logits, targets))
    ref = ref_accuracy(logits, targets)
    assert jnp.allclose(acc, ref, atol=1e-6), (acc, ref)

    # native bf16 path (no upcast, no padding; reference also computed in bf16
    # so argmax tie-breaking matches).  Exercises the clamped-duplicate-tile
    # path (16 bf16 sublane rows per tile > 8 rows per partition).
    logits_bf16 = logits.astype(jnp.bfloat16)
    acc_bf16 = jax.block_until_ready(masked_lm_accuracy(logits_bf16, targets))
    ref_bf16 = ref_accuracy(logits_bf16, targets)
    assert jnp.allclose(acc_bf16, ref_bf16, atol=1e-6), (acc_bf16, ref_bf16)

    print("KERNEL_OK")
</pallas_src>

<mosaic_0001>
module attributes {stable_mosaic.version = 11 : i64} {
  func.func @kernel(%arg0: i32, %arg1: i32, %arg2: memref<8x32xf32, #tpu.memory_space<vmem>>, %arg3: memref<8x1xi32, #tpu.memory_space<vmem>>, %arg4: memref<8x1xf32, #tpu.memory_space<vmem>>, %arg5: memref<8x1xf32, #tpu.memory_space<vmem>>) attributes {dimension_semantics = [#tpu.dimension_semantics<parallel>, #tpu.dimension_semantics<arbitrary>], iteration_bounds = array<i64: 2, 1>, scalar_prefetch = 0 : i64, scratch_operands = 0 : i64, tpu.core_type = #tpu.core_type<tc>, window_params = [{transform_indices = @transform_0, window_bounds = array<i64: 8, 32>}, {transform_indices = @transform_1, window_bounds = array<i64: 8, 1>}, {transform_indices = @transform_2, window_bounds = array<i64: 8, 1>}, {transform_indices = @transform_3, window_bounds = array<i64: 8, 1>}]} {
    %c0_i32 = arith.constant 0 : i32
    %0 = arith.cmpi eq, %arg1, %c0_i32 : i32
    %1 = arith.extui %0 : i1 to i32
    %c0_i32_0 = arith.constant 0 : i32
    %2 = arith.cmpi ne, %1, %c0_i32_0 : i32
    scf.if %2 {
      %cst_13 = arith.constant 0.000000e+00 : f32
      %39 = vector.broadcast %cst_13 : f32 to vector<8x1xf32>
      %c0_14 = arith.constant 0 : index
      %c0_15 = arith.constant 0 : index
      %40 = vector.load %arg4[%c0_14, %c0_15] : memref<8x1xf32, #tpu.memory_space<vmem>>, vector<8x1xf32>
      tpu.vector_store %arg4[%c0_14, %c0_15], %39 {strides = array<i32>} : memref<8x1xf32, #tpu.memory_space<vmem>>, vector<8x1xf32>,
      %cst_16 = arith.constant 0.000000e+00 : f32
      %41 = vector.broadcast %cst_16 : f32 to vector<8x1xf32>
      %c0_17 = arith.constant 0 : index
      %c0_18 = arith.constant 0 : index
      %42 = vector.load %arg5[%c0_17, %c0_18] : memref<8x1xf32, #tpu.memory_space<vmem>>, vector<8x1xf32>
      tpu.vector_store %arg5[%c0_17, %c0_18], %41 {strides = array<i32>} : memref<8x1xf32, #tpu.memory_space<vmem>>, vector<8x1xf32>,
    } else {
    }
    %c0 = arith.constant 0 : index
    %c0_1 = arith.constant 0 : index
    %3 = vector.load %arg2[%c0, %c0_1] : memref<8x32xf32, #tpu.memory_space<vmem>>, vector<8x32xf32>
    %c0_2 = arith.constant 0 : index
    %c0_3 = arith.constant 0 : index
    %4 = vector.load %arg3[%c0_2, %c0_3] : memref<8x1xi32, #tpu.memory_space<vmem>>, vector<8x1xi32>
    %cst = arith.constant dense<0xFF800000> : vector<8xf32>
    %5 = vector.multi_reduction <maximumf>, %3, %cst [1] : vector<8x32xf32> to vector<8xf32>
    %6 = vector.shape_cast %5 : vector<8xf32> to vector<8x1xf32>
    %7 = tpu.iota {dimensions = array<i32: 1>} : vector<1x32xi32>
    %8 = vector.broadcast %6 : vector<8x1xf32> to vector<8x32xf32>
    %9 = arith.cmpf oeq, %3, %8 : vector<8x32xf32>
    %c32_i32 = arith.constant 32 : i32
    %10 = vector.shape_cast %7 : vector<1x32xi32> to vector<1x32xi32>
    %11 = vector.broadcast %10 : vector<1x32xi32> to vector<8x32xi32>
    %12 = vector.broadcast %c32_i32 : i32 to vector<8x32xi32>
    %13 = arith.select %9, %11, %12 : vector<8x32xi1>, vector<8x32xi32>
    %cst_4 = arith.constant dense<2147483647> : vector<8xi32>
    %14 = vector.multi_reduction <minsi>, %13, %cst_4 [1] : vector<8x32xi32> to vector<8xi32>
    %15 = vector.shape_cast %14 : vector<8xi32> to vector<8x1xi32>
    %c1_i32 = arith.constant 1 : i32
    %16 = arith.muli %arg0, %c1_i32 : i32
    %17 = arith.addi %16, %arg1 : i32
    %c8_i32 = arith.constant 8 : i32
    %18 = arith.muli %17, %c8_i32 : i32
    %19 = tpu.iota {dimensions = array<i32: 0>} : vector<8x1xi32>
    %20 = vector.broadcast %18 : i32 to vector<8x1xi32>
    %21 = arith.addi %20, %19 : vector<8x1xi32>
    %c16_i32 = arith.constant 16 : i32
    %22 = vector.broadcast %c16_i32 : i32 to vector<8x1xi32>
    %23 = arith.cmpi slt, %21, %22 : vector<8x1xi32>
    %c3_i32 = arith.constant 3 : i32
    %24 = vector.broadcast %c3_i32 : i32 to vector<8x1xi32>
    %25 = arith.cmpi eq, %4, %24 : vector<8x1xi32>
    %26 = arith.andi %23, %25 : vector<8x1xi1>
    %27 = arith.cmpi eq, %15, %4 : vector<8x1xi32>
    %28 = arith.andi %26, %27 : vector<8x1xi1>
    %c0_5 = arith.constant 0 : index
    %c0_6 = arith.constant 0 : index
    %29 = vector.load %arg4[%c0_5, %c0_6] : memref<8x1xf32, #tpu.memory_space<vmem>>, vector<8x1xf32>
    %30 = arith.extui %28 : vector<8x1xi1> to vector<8x1xi32>
    %31 = arith.sitofp %30 : vector<8x1xi32> to vector<8x1xf32>
    %32 = arith.addf %29, %31 : vector<8x1xf32>
    %c0_7 = arith.constant 0 : index
    %c0_8 = arith.constant 0 : index
    %33 = vector.load %arg4[%c0_7, %c0_8] : memref<8x1xf32, #tpu.memory_space<vmem>>, vector<8x1xf32>
    tpu.vector_store %arg4[%c0_7, %c0_8], %32 {strides = array<i32>} : memref<8x1xf32, #tpu.memory_space<vmem>>, vector<8x1xf32>,
    %c0_9 = arith.constant 0 : index
    %c0_10 = arith.constant 0 : index
    %34 = vector.load %arg5[%c0_9, %c0_10] : memref<8x1xf32, #tpu.memory_space<vmem>>, vector<8x1xf32>
    %35 = arith.extui %26 : vector<8x1xi1> to vector<8x1xi32>
    %36 = arith.sitofp %35 : vector<8x1xi32> to vector<8x1xf32>
    %37 = arith.addf %34, %36 : vector<8x1xf32>
    %c0_11 = arith.constant 0 : index
    %c0_12 = arith.constant 0 : index
    %38 = vector.load %arg5[%c0_11, %c0_12] : memref<8x1xf32, #tpu.memory_space<vmem>>, vector<8x1xf32>
    tpu.vector_store %arg5[%c0_11, %c0_12], %37 {strides = array<i32>} : memref<8x1xf32, #tpu.memory_space<vmem>>, vector<8x1xf32>,
    return
  }
  func.func @transform_0(%arg0: i32, %arg1: i32) -> (i32, i32) {
    %c1_i32 = arith.constant 1 : i32
    %0 = arith.muli %arg0, %c1_i32 : i32
    %1 = arith.addi %0, %arg1 : i32
    %c1_i32_0 = arith.constant 1 : i32
    %2 = arith.minsi %1, %c1_i32_0 : i32
    %c0_i32 = arith.constant 0 : i32
    %c0_i32_1 = arith.constant 0 : i32
    return %2, %c0_i32 : i32, i32
  }
  func.func @transform_1(%arg0: i32, %arg1: i32) -> (i32, i32) {
    %c1_i32 = arith.constant 1 : i32
    %0 = arith.muli %arg0, %c1_i32 : i32
    %1 = arith.addi %0, %arg1 : i32
    %c1_i32_0 = arith.constant 1 : i32
    %2 = arith.minsi %1, %c1_i32_0 : i32
    %c0_i32 = arith.constant 0 : i32
    %c0_i32_1 = arith.constant 0 : i32
    return %2, %c0_i32 : i32, i32
  }
  func.func @transform_2(%arg0: i32, %arg1: i32) -> (i32, i32) {
    %c0_i32 = arith.constant 0 : i32
    %c0_i32_0 = arith.constant 0 : i32
    return %arg0, %c0_i32 : i32, i32
  }
  func.func @transform_3(%arg0: i32, %arg1: i32) -> (i32, i32) {
    %c0_i32 = arith.constant 0 : i32
    %c0_i32_0 = arith.constant 0 : i32
    return %arg0, %c0_i32 : i32, i32
  }
}

</mosaic_0001>

<bundles_post_ra>
// kernel: tpu_custom_call.1
= control target key start
LH: loop header
LB: loop body
LE: loop exit
PB: predicated region body
PF: predicated region fallthrough
CT: control target
= control target key end

     0   :  { %s496_s12 = smov 0   ;;  %s498_s13 = smov 0   ;;  %s554_s0 = inlined_call_operand.vmem [shape: f32[16,32], index: 0, kind: input, shape index: {}]   ;;  %s555_s1 = inlined_call_operand.vmem [shape: s32[16,1], index: 1, kind: input, shape index: {}]   ;;  %s556_s2 = inlined_call_operand.vmem [shape: f32[16,1], index: 2, kind: output, shape index: {0}]   ;;  %s557_s3 = inlined_call_operand.vmem [shape: f32[16,1], index: 3, kind: output, shape index: {1}]  }
   0x1   :  { %s500_s14 = smov 0  }
   0x2 LB: > { %s26_s15 = sadd.s32 1, %s469_s13  ;;  %p410_p0 = scmp.ge.s32.totalorder %s473_s14, 1  ;;  %s473_s14 = sphi %s500_s14, %s14_s14   ;;  %s469_s13 = sphi %s498_s13, %s561_s13   ;;  %s465_s12 = sphi %s496_s12, %s560_s12  }
   0x3   : > { %p28_p1 = scmp.ge.s32.totalorder %s26_s15, 2  ;;  %p184_p2 = scmp.lt.s32.totalorder %s473_s14, 3 }
   0x5   : > { %s563_s15 = smov (%p28_p1, %s26_s15), 0  ;;  %p185_p3 = pnand %p410_p0, %p184_p2 }
   0x6   : > { %p221_p4 = scmp.lt.s32.totalorder (!%p185_p3), %s465_s12, 1  ;;  %v261_v0 = vlaneseq (!%p185_p3)  ;;  %s421_s16 = sshll.u32 (!%p185_p3), %s465_s12, 3  ;;  %vm252_vm0 = vcmask (!%p185_p3), 7168   ;;  %vm257_vm1 = vcmask (!%p185_p3), 261120   ;;  %v475_v4 = vmov (!%p185_p3), 0.0  }
   0x7   : > { %188 = sbr.rel (%p185_p3) target bundleno = 466 (0x1d2), region = 28  ;;  %v284_v1 = vstv (!%p185_p3), %s421_s16 }
   0x8   : > { %v283_v2 = vshrl.u32 (!%p185_p3), %v261_v0, 7  ;;  %v262_v12 = vand.u32 (!%p185_p3), 127, %v261_v0 }
   0xa   : > { %v285_v3 = vadd.s32 (!%p185_p3), %v284_v1, %v283_v2 }
   0xc   : > { %vm286_vm2 = vcmp.lt.s32.totalorder (!%p185_p3), %v285_v3, 16 }
   0xe   : > { %s565_s12 = smov (!%p221_p4, %s465_s12), 1 }
   0xf   : > { %s224_s17 = scalar_select %p221_p4, %s565_s12, 1 }
  0x10   : > { %s419_s18 = sshll.u32 %s565_s12, 3 }
  0x11   : > { %s414_s19 = sshll.u32 %s224_s17, 3  ;;  %s517_s22 = scalar_lea.vmem %s556_s2, %s419_s18 }
  0x12   : > { %s226_s25 = scalar_lea.vmem %s554_s0, %s414_s19  ;;  %s236_s28 = scalar_lea.vmem %s555_s1, %s414_s19  ;;  %253 = vst.msk [vmem:[%s517_s22] sm:$0xff] %vm252_vm0, %v475_v4 }
  0x13   : > { %s247_s4 = scalar_lea.vmem %s557_s3, %s419_s18  ;;  %v255_v5 = vld [vmem:[%s226_s25] sm:$0xff] }
  0x14   : > { %v256_v6 = vld [vmem:[%s236_s28] sm:$0xff]  ;;  %254 = vst.msk [vmem:[%s247_s4] sm:$0xff] %vm252_vm0, %v475_v4  ;;  %v258_v7 = vsel %vm257_vm1, %v255_v5, -inf }
  0x15   : > { %vm287_vm3 = vcmp.eq.s32.totalorder %v256_v6, 3  ;;  %259 = vmax.xlane.f32.xlu0 %v258_v7 }
  0x16   : > { %vm532_vm4 = vmand %vm286_vm2, %vm287_vm3 }
  0x17   : > { %v423_v9 = vsel %vm532_vm4, 1.0, %v475_v4 }
  0x19   : > { %v291_v27 = vld [vmem:[%s517_s22] sm:$0xff] }
  0x1b   : > { %v297_v10 = vld [vmem:[%s247_s4] sm:$0xff] }
  0x1c   : > { %v300_v11 = vadd.f32 %v423_v9, %v297_v10 }
  0x1e   : > { %301 = vst.msk [vmem:[%s247_s4] sm:$0xff] %vm252_vm0, %v300_v11 }
  0xa2   : > { %v260_v13 = vpop.xlane.xlu0 %259 }
  0xa3   : > { %vm263_vm5 = vcmp.eq.f32.partialorder %v255_v5, %v260_v13 }
  0xa4   : > { %v264_v14 = vsel %vm263_vm5, %v262_v12, 32 }
  0xa5   : > { %v265_v15 = vsel %vm257_vm1, %v264_v14, 2147483647 }
  0xa6   : > { %v267_v16 = vshra.s32 %v265_v15, 16  ;;  %v266_v18 = vand.u32 65535, %v265_v15 }
  0xa8   : > { %v269_v17 = vcvt.s32.f32 %v267_v16  ;;  %v268_v20 = vcvt.s32.f32 %v266_v18 }
  0xaa   : > { %270 = vmin.xlane.f32.xlu0 %v269_v17 }
 0x137   : > { %v271_v19 = vpop.xlane.xlu0 %270 }
 0x138   : > { %vm272_vm6 = vcmp.eq.f32.partialorder %v269_v17, %v271_v19  ;;  %v277_v22 = vcvt.f32.s32 %v271_v19 }
 0x139   : > { %v273_v21 = vsel %vm272_vm6, %v268_v20, inf }
 0x13a   : > { %274 = vmin.xlane.f32.xlu1 %v273_v21  ;;  %v278_v24 = vshll.u32 %v277_v22, 16 }
 0x1c7   : > { %v275_v23 = vpop.xlane.xlu1 %274 }
 0x1c8   : > { %v276_v25 = vcvt.f32.s32 %v275_v23 }
 0x1ca   : > { %v279_v26 = vadd.s32 %v278_v24, %v276_v25 }
 0x1cc   : > { %vm289_vm7 = vcmp.eq.s32.totalorder %v279_v26, %v256_v6 }
 0x1cd   : > { %vm290_vm8 = vmand %vm532_vm4, %vm289_vm7 }
 0x1ce   : > { %v422_v28 = vsel %vm290_vm8, 1.0, %v475_v4 }
 0x1cf   : > { %v294_v29 = vadd.f32 %v422_v28, %v291_v27 }
 0x1d1   : > { %296 = vst.msk [vmem:[%s517_s22] sm:$0xff] %vm252_vm0, %v294_v29 }
 0x1d2 PF: > { %s14_s14 = sadd.s32 1, %s473_s14   ;;  %s560_s12 = smov %s469_s13 }
 0x1d3   : > { %p11_p5 = scmp.ge.s32.totalorder %s14_s14, 4   ;;  %s561_s13 = smov %s563_s15 }
 0x1d5   :  { %13 = sbr.rel (!%p11_p5) target bundleno = 2 (0x2), region = 77 }

</bundles_post_ra>
